<compile_context>
chip_gen: v7x
topology: tpu7x:2x2x1
jax: 0.10.0
libtpu: 0.0.40
codegen_flags: <defaults>
</compile_context>

<pallas_src>
import jax
import jax.numpy as jnp
from jax.experimental import pallas as pl
from jax.experimental.pallas import tpu as pltpu


# ----------------------------------------------------------------------------
# Fused Pallas kernel: entire forward pass (no grid, everything VMEM-resident)
# ----------------------------------------------------------------------------
def fused_net_kernel(x_ref, wa_ref, f1_ref, b_ref, o_ref):
    # x:  (Npad, 128) f32   flattened NCHW input, zero-padded to 128 lanes
    # wa: (128, 896) bf16   [ A1 (512 lanes) | G2 (128) | F2 (128) | F3 (128) ]
    #     A1 block h (lanes h*128..): conv1+pad+im2col+pool, lane = wp*20 + c1
    #     G2: conv2+pool effective weights, row = wp*20 + c1, col = c2
    # f1: (512, 128) bf16   fc1 with NCHW flatten baked in; row block per h
    # b:  (8, 128)  f32     row0 = fc1 bias, row1 = fc2 bias, row2 = fc3 bias
    x = x_ref[...].astype(jnp.bfloat16)
    wa = wa_ref[...]
    a1 = wa[:, 0:512]
    g2 = wa[:, 512:640]
    f2 = wa[:, 640:768]
    f3 = wa[:, 768:896]

    # conv1 (+pad, im2col, (1,2) avg-pool) for all (h, wp) positions in one
    # MXU matmul; ReLU in f32.
    y1 = jnp.maximum(
        jnp.dot(x, a1, preferred_element_type=jnp.float32), 0.0)   # (Npad, 512)

    acc1 = jnp.zeros((x.shape[0], 128), jnp.float32)                # fc1 pre-act
    for h in range(4):                                              # static unroll
        # conv2 (+ (1,2) avg-pool) at height h: the 4 conv1 pooled widths are
        # dense lanes of one 128-wide block -> single (Npad,128)@(128,128).
        y2 = jnp.maximum(
            jnp.dot(y1[:, h * 128:(h + 1) * 128].astype(jnp.bfloat16), g2,
                    preferred_element_type=jnp.float32), 0.0)
        # fc1 with the NCHW flatten permutation folded into its rows.
        acc1 = acc1 + jnp.dot(y2.astype(jnp.bfloat16),
                              f1_ref[h * 128:(h + 1) * 128, :],
                              preferred_element_type=jnp.float32)

    h1 = jnp.maximum(acc1 + b_ref[0:1, :], 0.0)
    h2 = jnp.maximum(
        jnp.dot(h1.astype(jnp.bfloat16), f2,
                preferred_element_type=jnp.float32) + b_ref[1:2, :], 0.0)
    o_ref[...] = (jnp.dot(h2.astype(jnp.bfloat16), f3,
                          preferred_element_type=jnp.float32)
                  + b_ref[2:3, :]).astype(o_ref.dtype)


def net_forward(x, packed):
    """x: (N, 3, 3, 8) float32 NCHW. Returns (N, 2)."""
    n = x.shape[0]
    npad = max(8, ((n + 7) // 8) * 8)                   # sublane-aligned rows
    xf = x.reshape(n, -1).astype(jnp.float32)           # (N, 72), (c,h,w) order
    xf = jnp.pad(xf, ((0, npad - n), (0, 128 - xf.shape[1])))

    vmem = pl.BlockSpec(memory_space=pltpu.MemorySpace.VMEM)
    flops = 2 * npad * (128 * 512 + 4 * (128 * 128 + 128 * 128) + 2 * 128 * 128)
    bytes_accessed = (xf.size * 4 + packed["WA"].size * 2
                      + packed["F1"].size * 2 + packed["B"].size * 4
                      + npad * 128 * 4)
    out = pl.pallas_call(
        fused_net_kernel,
        out_shape=jax.ShapeDtypeStruct((npad, 128), jnp.float32),
        in_specs=[vmem, vmem, vmem, vmem],
        out_specs=vmem,
        cost_estimate=pl.CostEstimate(flops=flops, transcendentals=0,
                                      bytes_accessed=bytes_accessed),
    )(xf, packed["WA"], packed["F1"], packed["B"])
    return out[:n, :2]                                   # lane-dense -> (N, 2)


# ----------------------------------------------------------------------------
# One-time weight packing (outside the jitted hot path)
# ----------------------------------------------------------------------------
def pack_params(P):
    f32 = jnp.float32
    cin, H, W = 3, 3, 8
    kh, kw = 2, 3
    hi = jax.lax.Precision.HIGHEST

    # --- conv1: compose pad + im2col + (1,2) avg-pool + weights into A1 -----
    # Push the 72 input basis vectors through pad/im2col/pool, then contract
    # with conv1 weights (0.5 folds the avg-pool).
    eye = jnp.eye(cin * H * W, dtype=f32).reshape(-1, cin, H, W)       # (72,3,3,8)
    ep = jnp.pad(eye, ((0, 0), (0, 0), (1, 1), (1, 1)))                # (72,3,5,10)
    ho, wo = H + 2 - kh + 1, W + 2 - kw + 1                            # 4, 8
    cols = [ep[:, :, ki:ki + ho, kj:kj + wo]
            for ki in range(kh) for kj in range(kw)]
    pat = jnp.stack(cols, axis=-1)                                     # (72,3,4,8,6)
    pat = jnp.transpose(pat, (0, 2, 3, 1, 4)).reshape(-1, ho, wo, cin * kh * kw)
    pat = pat.reshape(-1, ho, wo // 2, 2, cin * kh * kw).sum(3)        # (72,4,4,18)
    w1 = P["conv1_w"].reshape(20, cin * kh * kw).astype(f32)           # (20,18)
    # Dense pack: per height h, lane = wp*20 + out_channel  (80 active lanes).
    A = 0.5 * jnp.einsum('khwf,of->hkwo', pat, w1, precision=hi)       # (4,72,4,20)
    A = A.reshape(4, 72, 80)                                           # (h,k,wp*20+o)
    A1 = jnp.zeros((4, 128, 128), f32).at[:, :72, :80].set(A)
    A1 = jnp.transpose(A1, (1, 0, 2)).reshape(128, 512)                # (128,512)

    # --- conv2 (k=(1,3)) + (1,2) avg-pool -> single effective weight G2 -----
    w2 = P["conv2_w"][:, :, 0, :].astype(f32)                          # (40,20,3)
    g = jnp.stack([w2[..., 0],
                   w2[..., 0] + w2[..., 1],
                   w2[..., 1] + w2[..., 2],
                   w2[..., 2]], axis=0)                                # (4,40,20)
    g = 0.5 * jnp.transpose(g, (0, 2, 1))                              # (4,20,40)
    G2 = jnp.zeros((128, 128), f32).at[:80, :40].set(g.reshape(80, 40))

    # --- fc1 with NCHW flatten (index = c2*4 + h) baked into the rows --------
    f1 = P["fc1_w"].astype(f32).reshape(120, 40, 4)                    # (j,o,h)
    f1 = jnp.transpose(f1, (2, 1, 0))                                  # (h,o,j)
    F1 = jnp.zeros((4, 128, 128), f32).at[:, :40, :120].set(f1).reshape(512, 128)

    F2 = jnp.zeros((128, 128), f32).at[:120, :80].set(P["fc2_w"].astype(f32).T)
    F3 = jnp.zeros((128, 128), f32).at[:80, :2].set(P["fc3_w"].astype(f32).T)

    # One lane-concatenated bf16 weight slab: fewer, bigger DMAs.
    WA = jnp.concatenate([A1, G2, F2, F3], axis=1).astype(jnp.bfloat16)  # (128,896)

    # All biases in one f32 buffer (element-wise work stays f32).
    B = jnp.zeros((8, 128), f32)
    B = B.at[0, :120].set(P["fc1_b"].astype(f32))
    B = B.at[1, :80].set(P["fc2_b"].astype(f32))
    B = B.at[2, :2].set(P["fc3_b"].astype(f32))

    return {"WA": WA, "F1": F1.astype(jnp.bfloat16), "B": B}


# ----------------------------------------------------------------------------
# Pure-JAX reference (numerical verification only, full f32)
# ----------------------------------------------------------------------------
def ref_forward(x, P):
    dn = ("NCHW", "OIHW", "NCHW")
    y = jax.lax.conv_general_dilated(x, P["conv1_w"], (1, 1),
                                     ((1, 1), (1, 1)), dimension_numbers=dn)
    n, c, h, w = y.shape
    y = jnp.maximum(y.reshape(n, c, h, w // 2, 2).mean(-1), 0.0)
    y = jax.lax.conv_general_dilated(y, P["conv2_w"], (1, 1),
                                     "VALID", dimension_numbers=dn)
    n, c, h, w = y.shape
    y = jnp.maximum(y.reshape(n, c, h, w // 2, 2).mean(-1), 0.0)
    y = y.reshape(n, -1)
    y = jnp.maximum(y @ P["fc1_w"].T + P["fc1_b"], 0.0)
    y = jnp.maximum(y @ P["fc2_w"].T + P["fc2_b"], 0.0)
    return y @ P["fc3_w"].T + P["fc3_b"]


# ----------------------------------------------------------------------------
def init_params(key):
    ks = jax.random.split(key, 8)
    s = 0.1
    return {
        "conv1_w": s * jax.random.normal(ks[0], (20, 3, 2, 3), jnp.float32),
        "conv2_w": s * jax.random.normal(ks[1], (40, 20, 1, 3), jnp.float32),
        "fc1_w":   s * jax.random.normal(ks[2], (120, 160), jnp.float32),
        "fc1_b":   s * jax.random.normal(ks[3], (120,), jnp.float32),
        "fc2_w":   s * jax.random.normal(ks[4], (80, 120), jnp.float32),
        "fc2_b":   s * jax.random.normal(ks[5], (80,), jnp.float32),
        "fc3_w":   s * jax.random.normal(ks[6], (2, 80), jnp.float32),
        "fc3_b":   s * jax.random.normal(ks[7], (2,), jnp.float32),
    }


if __name__ == "__main__":
    key = jax.random.PRNGKey(0)
    kx, kp = jax.random.split(key)
    # (N=2, C=3, H=3, W=8) -> flatten size 40*4*1 = 160 as the module requires
    x = jax.random.normal(kx, (2, 3, 3, 8), jnp.float32)
    params = init_params(kp)

    packed = pack_params(params)          # one-time packing, outside the hot path
    fwd = jax.jit(net_forward)
    out = jax.block_until_ready(fwd(x, packed))

    ref = ref_forward(x, params)
    assert out.shape == (2, 2)
    # bf16 weights / bf16 MXU operands with f32 accumulation: ~1% tolerance.
    assert jnp.allclose(out, ref, atol=2e-2, rtol=2e-2), (out, ref)
    print("KERNEL_OK")
</pallas_src>

<mosaic_0001>
module attributes {stable_mosaic.version = 11 : i64} {
  func.func @fused_net_kernel(%arg0: memref<8x128xf32, #tpu.memory_space<vmem>>, %arg1: memref<128x896xbf16, #tpu.memory_space<vmem>>, %arg2: memref<512x128xbf16, #tpu.memory_space<vmem>>, %arg3: memref<8x128xf32, #tpu.memory_space<vmem>>, %arg4: memref<8x128xf32, #tpu.memory_space<vmem>>) attributes {dimension_semantics = [], scalar_prefetch = 0 : i64, scratch_operands = 0 : i64, tpu.core_type = #tpu.core_type<tc>} {
    %c0 = arith.constant 0 : index
    %c0_0 = arith.constant 0 : index
    %0 = vector.load %arg0[%c0, %c0_0] : memref<8x128xf32, #tpu.memory_space<vmem>>, vector<8x128xf32>
    %1 = arith.truncf %0 : vector<8x128xf32> to vector<8x128xbf16>
    %c0_1 = arith.constant 0 : index
    %c0_2 = arith.constant 0 : index
    %2 = vector.load %arg1[%c0_1, %c0_2] : memref<128x896xbf16, #tpu.memory_space<vmem>>, vector<128x896xbf16>
    %3 = vector.extract_strided_slice %2 {offsets = [0, 0], sizes = [128, 512], strides = [1, 1]} : vector<128x896xbf16> to vector<128x512xbf16>
    %4 = vector.extract_strided_slice %2 {offsets = [0, 512], sizes = [128, 128], strides = [1, 1]} : vector<128x896xbf16> to vector<128x128xbf16>
    %5 = vector.extract_strided_slice %2 {offsets = [0, 640], sizes = [128, 128], strides = [1, 1]} : vector<128x896xbf16> to vector<128x128xbf16>
    %6 = vector.extract_strided_slice %2 {offsets = [0, 768], sizes = [128, 128], strides = [1, 1]} : vector<128x896xbf16> to vector<128x128xbf16>
    %cst = arith.constant dense<0.000000e+00> : vector<8x512xf32>
    %7 = tpu.matmul %1, %3, %cst {dimension_numbers = #tpu.dot_dimension_numbers<[1], [0], [0], [1], [0, 0, 1, 1], [], []>} : vector<8x128xbf16>, vector<128x512xbf16>, vector<8x512xf32> -> vector<8x512xf32>
    %cst_3 = arith.constant 0.000000e+00 : f32
    %8 = vector.broadcast %cst_3 : f32 to vector<8x512xf32>
    %9 = arith.maximumf %7, %8 : vector<8x512xf32>
    %cst_4 = arith.constant 0.000000e+00 : f32
    %10 = vector.broadcast %cst_4 : f32 to vector<8x128xf32>
    %11 = vector.extract_strided_slice %9 {offsets = [0, 0], sizes = [8, 128], strides = [1, 1]} : vector<8x512xf32> to vector<8x128xf32>
    %12 = arith.truncf %11 : vector<8x128xf32> to vector<8x128xbf16>
    %cst_5 = arith.constant dense<0.000000e+00> : vector<8x128xf32>
    %13 = tpu.matmul %12, %4, %cst_5 {dimension_numbers = #tpu.dot_dimension_numbers<[1], [0], [0], [1], [0, 0, 1, 1], [], []>} : vector<8x128xbf16>, vector<128x128xbf16>, vector<8x128xf32> -> vector<8x128xf32>
    %cst_6 = arith.constant 0.000000e+00 : f32
    %14 = vector.broadcast %cst_6 : f32 to vector<8x128xf32>
    %15 = arith.maximumf %13, %14 : vector<8x128xf32>
    %16 = arith.truncf %15 : vector<8x128xf32> to vector<8x128xbf16>
    %c0_7 = arith.constant 0 : index
    %c0_8 = arith.constant 0 : index
    %17 = vector.load %arg2[%c0_7, %c0_8] : memref<512x128xbf16, #tpu.memory_space<vmem>>, vector<128x128xbf16>
    %cst_9 = arith.constant dense<0.000000e+00> : vector<8x128xf32>
    %18 = tpu.matmul %16, %17, %cst_9 {dimension_numbers = #tpu.dot_dimension_numbers<[1], [0], [0], [1], [0, 0, 1, 1], [], []>} : vector<8x128xbf16>, vector<128x128xbf16>, vector<8x128xf32> -> vector<8x128xf32>
    %19 = arith.addf %10, %18 : vector<8x128xf32>
    %20 = vector.extract_strided_slice %9 {offsets = [0, 128], sizes = [8, 128], strides = [1, 1]} : vector<8x512xf32> to vector<8x128xf32>
    %21 = arith.truncf %20 : vector<8x128xf32> to vector<8x128xbf16>
    %cst_10 = arith.constant dense<0.000000e+00> : vector<8x128xf32>
    %22 = tpu.matmul %21, %4, %cst_10 {dimension_numbers = #tpu.dot_dimension_numbers<[1], [0], [0], [1], [0, 0, 1, 1], [], []>} : vector<8x128xbf16>, vector<128x128xbf16>, vector<8x128xf32> -> vector<8x128xf32>
    %cst_11 = arith.constant 0.000000e+00 : f32
    %23 = vector.broadcast %cst_11 : f32 to vector<8x128xf32>
    %24 = arith.maximumf %22, %23 : vector<8x128xf32>
    %25 = arith.truncf %24 : vector<8x128xf32> to vector<8x128xbf16>
    %c128 = arith.constant 128 : index
    %c0_12 = arith.constant 0 : index
    %26 = vector.load %arg2[%c128, %c0_12] : memref<512x128xbf16, #tpu.memory_space<vmem>>, vector<128x128xbf16>
    %cst_13 = arith.constant dense<0.000000e+00> : vector<8x128xf32>
    %27 = tpu.matmul %25, %26, %cst_13 {dimension_numbers = #tpu.dot_dimension_numbers<[1], [0], [0], [1], [0, 0, 1, 1], [], []>} : vector<8x128xbf16>, vector<128x128xbf16>, vector<8x128xf32> -> vector<8x128xf32>
    %28 = arith.addf %19, %27 : vector<8x128xf32>
    %29 = vector.extract_strided_slice %9 {offsets = [0, 256], sizes = [8, 128], strides = [1, 1]} : vector<8x512xf32> to vector<8x128xf32>
    %30 = arith.truncf %29 : vector<8x128xf32> to vector<8x128xbf16>
    %cst_14 = arith.constant dense<0.000000e+00> : vector<8x128xf32>
    %31 = tpu.matmul %30, %4, %cst_14 {dimension_numbers = #tpu.dot_dimension_numbers<[1], [0], [0], [1], [0, 0, 1, 1], [], []>} : vector<8x128xbf16>, vector<128x128xbf16>, vector<8x128xf32> -> vector<8x128xf32>
    %cst_15 = arith.constant 0.000000e+00 : f32
    %32 = vector.broadcast %cst_15 : f32 to vector<8x128xf32>
    %33 = arith.maximumf %31, %32 : vector<8x128xf32>
    %34 = arith.truncf %33 : vector<8x128xf32> to vector<8x128xbf16>
    %c256 = arith.constant 256 : index
    %c0_16 = arith.constant 0 : index
    %35 = vector.load %arg2[%c256, %c0_16] : memref<512x128xbf16, #tpu.memory_space<vmem>>, vector<128x128xbf16>
    %cst_17 = arith.constant dense<0.000000e+00> : vector<8x128xf32>
    %36 = tpu.matmul %34, %35, %cst_17 {dimension_numbers = #tpu.dot_dimension_numbers<[1], [0], [0], [1], [0, 0, 1, 1], [], []>} : vector<8x128xbf16>, vector<128x128xbf16>, vector<8x128xf32> -> vector<8x128xf32>
    %37 = arith.addf %28, %36 : vector<8x128xf32>
    %38 = vector.extract_strided_slice %9 {offsets = [0, 384], sizes = [8, 128], strides = [1, 1]} : vector<8x512xf32> to vector<8x128xf32>
    %39 = arith.truncf %38 : vector<8x128xf32> to vector<8x128xbf16>
    %cst_18 = arith.constant dense<0.000000e+00> : vector<8x128xf32>
    %40 = tpu.matmul %39, %4, %cst_18 {dimension_numbers = #tpu.dot_dimension_numbers<[1], [0], [0], [1], [0, 0, 1, 1], [], []>} : vector<8x128xbf16>, vector<128x128xbf16>, vector<8x128xf32> -> vector<8x128xf32>
    %cst_19 = arith.constant 0.000000e+00 : f32
    %41 = vector.broadcast %cst_19 : f32 to vector<8x128xf32>
    %42 = arith.maximumf %40, %41 : vector<8x128xf32>
    %43 = arith.truncf %42 : vector<8x128xf32> to vector<8x128xbf16>
    %c384 = arith.constant 384 : index
    %c0_20 = arith.constant 0 : index
    %44 = vector.load %arg2[%c384, %c0_20] : memref<512x128xbf16, #tpu.memory_space<vmem>>, vector<128x128xbf16>
    %cst_21 = arith.constant dense<0.000000e+00> : vector<8x128xf32>
    %45 = tpu.matmul %43, %44, %cst_21 {dimension_numbers = #tpu.dot_dimension_numbers<[1], [0], [0], [1], [0, 0, 1, 1], [], []>} : vector<8x128xbf16>, vector<128x128xbf16>, vector<8x128xf32> -> vector<8x128xf32>
    %46 = arith.addf %37, %45 : vector<8x128xf32>
    %c0_22 = arith.constant 0 : index
    %c0_23 = arith.constant 0 : index
    %47 = vector.load %arg3[%c0_22, %c0_23] : memref<8x128xf32, #tpu.memory_space<vmem>>, vector<1x128xf32>
    %48 = vector.broadcast %47 : vector<1x128xf32> to vector<8x128xf32>
    %49 = arith.addf %46, %48 : vector<8x128xf32>
    %cst_24 = arith.constant 0.000000e+00 : f32
    %50 = vector.broadcast %cst_24 : f32 to vector<8x128xf32>
    %51 = arith.maximumf %49, %50 : vector<8x128xf32>
    %52 = arith.truncf %51 : vector<8x128xf32> to vector<8x128xbf16>
    %cst_25 = arith.constant dense<0.000000e+00> : vector<8x128xf32>
    %53 = tpu.matmul %52, %5, %cst_25 {dimension_numbers = #tpu.dot_dimension_numbers<[1], [0], [0], [1], [0, 0, 1, 1], [], []>} : vector<8x128xbf16>, vector<128x128xbf16>, vector<8x128xf32> -> vector<8x128xf32>
    %c1 = arith.constant 1 : index
    %c0_26 = arith.constant 0 : index
    %54 = vector.load %arg3[%c1, %c0_26] : memref<8x128xf32, #tpu.memory_space<vmem>>, vector<1x128xf32>
    %55 = vector.broadcast %54 : vector<1x128xf32> to vector<8x128xf32>
    %56 = arith.addf %53, %55 : vector<8x128xf32>
    %cst_27 = arith.constant 0.000000e+00 : f32
    %57 = vector.broadcast %cst_27 : f32 to vector<8x128xf32>
    %58 = arith.maximumf %56, %57 : vector<8x128xf32>
    %59 = arith.truncf %58 : vector<8x128xf32> to vector<8x128xbf16>
    %cst_28 = arith.constant dense<0.000000e+00> : vector<8x128xf32>
    %60 = tpu.matmul %59, %6, %cst_28 {dimension_numbers = #tpu.dot_dimension_numbers<[1], [0], [0], [1], [0, 0, 1, 1], [], []>} : vector<8x128xbf16>, vector<128x128xbf16>, vector<8x128xf32> -> vector<8x128xf32>
    %c2 = arith.constant 2 : index
    %c0_29 = arith.constant 0 : index
    %61 = vector.load %arg3[%c2, %c0_29] : memref<8x128xf32, #tpu.memory_space<vmem>>, vector<1x128xf32>
    %62 = vector.broadcast %61 : vector<1x128xf32> to vector<8x128xf32>
    %63 = arith.addf %60, %62 : vector<8x128xf32>
    %c0_30 = arith.constant 0 : index
    %c0_31 = arith.constant 0 : index
    %64 = vector.load %arg4[%c0_30, %c0_31] : memref<8x128xf32, #tpu.memory_space<vmem>>, vector<8x128xf32>
    tpu.vector_store %arg4[%c0_30, %c0_31], %63 {strides = array<i32>} : memref<8x128xf32, #tpu.memory_space<vmem>>, vector<8x128xf32>,
    return
  }
}

</mosaic_0001>

<bundles_post_ra>
// kernel: net_forward.1
= control target key start
LH: loop header
LB: loop body
LE: loop exit
PB: predicated region body
PF: predicated region fallthrough
CT: control target
= control target key end

     0   :  { %9 = vsyncpa [#allocation3], 0  ;;  %s1963_s0 = inlined_call_operand.vmem [shape: f32[8,128], index: 0, kind: input, shape index: {}]   ;;  %s1964_s1 = inlined_call_operand.hbm [shape: bf16[128,896], index: 1, kind: input, shape index: {}]   ;;  %s1965_s2 = inlined_call_operand.hbm [shape: bf16[512,128], index: 2, kind: input, shape index: {}]   ;;  %s1966_s3 = inlined_call_operand.vmem [shape: f32[8,128], index: 3, kind: input, shape index: {}]   ;;  %s1967_s4 = inlined_call_operand.vmem [shape: f32[8,128], index: 4, kind: output, shape index: {}]  }
   0x1   :  { %10 = vsyncpa [#allocation5], 0  ;;  %s1733_s15 = smov [#allocation2]   ;;  %s1685_s19 = scalar_lea.hbm %s1964_s1, 7168 }
   0x2   :  { %s18_s16 = sshll.u32 %s1733_s15, 4  ;;  %p1686_p0 = scmp.ne.s32.totalorder %s1964_s1, %s1685_s19  ;;  %s19_s16 = int_to_ptr.vmem [resolvable:$true] %s18_s16 }
   0x3   :  { %p1689_p1 = scmp.lt.u32.totalorder %s1685_s19, %s1964_s1 }
   0x5   :  { %p1691_p2 = pnand %p1689_p1, %p1686_p0 }
   0x7   :  { %1694 = shalt.err (!%p1691_p2)
}
   0x8   :  { %s1695_s24 = scalar_lea.vmem %s19_s16, 7168  ;;  %p1700_p4 = scmp.lt.s32.totalorder %s19_s16, %s19_s16 }
   0x9   :  { %p1696_p3 = scmp.ne.s32.totalorder %s19_s16, %s1695_s24  ;;  %p1701_p5 = scmp.lt.s32.totalorder %s1695_s24, %s1695_s24 }
   0xb   :  { %p1702_p6 = por %p1701_p5, %p1700_p4 }
   0xd   :  { %p1703_p7 = pnand %p1702_p6, %p1696_p3 }
   0xf   :  { %1706 = shalt.err (!%p1703_p7)
}
  0x10   :  { %s1734_s25 = smov 448   ;;  %s1735_s26 = smov 28  }
  0x11   :  { %24 = dma.hbm_to_vmem [thread:$0]  %s1964_s1, 7168, %s19_s16, [#allocation3], %s1734_s25, %s1734_s25, %s1735_s26  }
  0x12   :  { %s1736_s29 = smov [#allocation4]   ;;  %s1707_s7 = scalar_lea.hbm %s1965_s2, 4096 }
  0x13   :  { %s30_s30 = sshll.u32 %s1736_s29, 4  ;;  %p1708_p8 = scmp.ne.s32.totalorder %s1965_s2, %s1707_s7  ;;  %s31_s30 = int_to_ptr.vmem [resolvable:$true] %s30_s30 }
  0x14   :  { %p1711_p9 = scmp.lt.u32.totalorder %s1707_s7, %s1965_s2 }
  0x16   :  { %p1713_p10 = pnand %p1711_p9, %p1708_p8 }
  0x18   :  { %1716 = shalt.err (!%p1713_p10)
}
  0x19   :  { %s1717_s12 = scalar_lea.vmem %s31_s30, 4096  ;;  %p1722_p12 = scmp.lt.s32.totalorder %s31_s30, %s31_s30 }
  0x1a   :  { %p1718_p11 = scmp.ne.s32.totalorder %s31_s30, %s1717_s12  ;;  %p1723_p13 = scmp.lt.s32.totalorder %s1717_s12, %s1717_s12 }
  0x1c   :  { %p1724_p0 = por %p1723_p13, %p1722_p12 }
  0x1e   :  { %p1725_p1 = pnand %p1724_p0, %p1718_p11 }
  0x20   :  { %1728 = shalt.err (!%p1725_p1)
}
  0x21   :  { %s1737_s1 = smov 64   ;;  %s1738_s13 = smov 4  }
  0x22   :  { %36 = dma.hbm_to_vmem [thread:$0]  %s1965_s2, 4096, %s31_s30, [#allocation5], %s1737_s1, %s1737_s1, %s1738_s13  }
  0x23   :  { %1729 = dma.done.wait [#allocation3], 7168  }
  0x24   :  { %1730 = vsyncadd [#allocation3], 4294960128 }
  0x25   :  { %1731 = dma.done.wait [#allocation5], 4096  }
  0x26   :  { %1732 = vsyncadd [#allocation5], 4294963200  ;;  %v1739_v0 = vmov 0   ;;  %v1573_v1 = vld [vmem:[#allocation2 + $0x4] ss:$28 sps:$4 sm:$0xff]   ;;  %v1740_v34 = vmov 0.0  }
  0x27   :  { %304 = vmatprep.mubr.bf16.mxu0 %v1739_v0  ;;  %345 = vmatprep.mubr.bf16.mxu1 %v1739_v0  ;;  %v1575_v2 = vld [vmem:[#allocation2] ss:$28 sps:$4 sm:$0xff]   ;;  %v1578_v4 = vld [vmem:[#allocation2 + $0x38] ss:$28 sps:$4 sm:$0xff]   ;;  %v1581_v6 = vld [vmem:[#allocation2 + $0x70] ss:$28 sps:$4 sm:$0xff]  }
  0x28   :  { %272 = vmatprep.subr.bf16.mxu0 %v1573_v1  ;;  %v1576_v3 = vld [vmem:[#allocation2 + $0x3c] ss:$28 sps:$4 sm:$0xff]   ;;  %v1579_v5 = vld [vmem:[#allocation2 + $0x74] ss:$28 sps:$4 sm:$0xff]   ;;  %v1582_v7 = vld [vmem:[#allocation2 + $0xac] ss:$28 sps:$4 sm:$0xff]  }
  0x29   :  { %273 = vmatpush1.bf16.msra.mxu0 %v1575_v2  ;;  %v1584_v8 = vld [vmem:[#allocation2 + $0xa8] ss:$28 sps:$4 sm:$0xff]   ;;  %v1587_v13 = vld [vmem:[#allocation2 + $0xe0] ss:$28 sps:$4 sm:$0xff]   ;;  %v1590_v17 = vld [vmem:[#allocation2 + $0x118] ss:$28 sps:$4 sm:$0xff]  }
  0x2a   :  { %274 = vmatprep.subr.bf16.mxu0 %v1576_v3  ;;  %v1585_v9 = vld [vmem:[#allocation2 + $0xe4] ss:$28 sps:$4 sm:$0xff]   ;;  %v1597_v10 = vld [vmem:[#allocation2 + $0xc] ss:$28 sps:$4 sm:$0xff]   ;;  %v1603_v15 = vld [vmem:[#allocation2 + $0x7c] ss:$28 sps:$4 sm:$0xff]  }
  0x2b   :  { %v1599_v11 = vld [vmem:[#allocation2 + $0x8] ss:$28 sps:$4 sm:$0xff]   ;;  %313 = vmatprep.subr.bf16.mxu1 %v1597_v10  ;;  %v1602_v14 = vld [vmem:[#allocation2 + $0x40] ss:$28 sps:$4 sm:$0xff]   ;;  %v1605_v18 = vld [vmem:[#allocation2 + $0x78] ss:$28 sps:$4 sm:$0xff]  }
  0x2c   :  { %v1600_v12 = vld [vmem:[#allocation2 + $0x44] ss:$28 sps:$4 sm:$0xff]   ;;  %314 = vmatpush1.bf16.msra.mxu1 %v1599_v11  ;;  %v1588_v16 = vld [vmem:[#allocation2 + $0x11c] ss:$28 sps:$4 sm:$0xff]   ;;  %v1606_v19 = vld [vmem:[#allocation2 + $0xb4] ss:$28 sps:$4 sm:$0xff]  }
  0x2d   :  { %275 = vmatpush1.bf16.msra.mxu0 %v1578_v4  ;;  %315 = vmatprep.subr.bf16.mxu1 %v1600_v12  ;;  %v1591_v20 = vld [vmem:[#allocation2 + $0x154] ss:$28 sps:$4 sm:$0xff]   ;;  %v1609_v23 = vld [vmem:[#allocation2 + $0xec] ss:$28 sps:$4 sm:$0xff]   ;;  %v46_v26 = vld [vmem:[%s1963_s0] sm:$0xff]  ;;  %vm1741_vm0 = vmmov 0  }
  0x2e   :  { %276 = vmatprep.subr.bf16.mxu0 %v1579_v5  ;;  %v1593_v21 = vld [vmem:[#allocation2 + $0x150] ss:$28 sps:$4 sm:$0xff]   ;;  %v1596_v25 = vld [vmem:[#allocation2 + $0x188] ss:$28 sps:$4 sm:$0xff]   ;;  %v1614_v29 = vld [vmem:[#allocation2 + $0x120] ss:$28 sps:$4 sm:$0xff]   ;;  %v47_v32 = vpack.c.bf16 %v46_v26, %v46_v26 }
  0x2f   :  { %v1608_v22 = vld [vmem:[#allocation2 + $0xb0] ss:$28 sps:$4 sm:$0xff]   ;;  %v1611_v27 = vld [vmem:[#allocation2 + $0xe8] ss:$28 sps:$4 sm:$0xff]   ;;  %v1615_v30 = vld [vmem:[#allocation2 + $0x15c] ss:$28 sps:$4 sm:$0xff]  }
  0x30   :  { %316 = vmatpush1.bf16.msra.mxu1 %v1602_v14  ;;  %v1594_v24 = vld [vmem:[#allocation2 + $0x18c] ss:$28 sps:$4 sm:$0xff]   ;;  %v1612_v28 = vld [vmem:[#allocation2 + $0x124] ss:$28 sps:$4 sm:$0xff]   ;;  %v1617_v33 = vld [vmem:[#allocation2 + $0x158] ss:$28 sps:$4 sm:$0xff]  }
  0x31   :  { %277 = vmatpush1.bf16.msra.mxu0 %v1581_v6  ;;  %317 = vmatprep.subr.bf16.mxu1 %v1603_v15  ;;  %v1794_v31 = vld [vmem:[#allocation2 + $0x10] ss:$28 sps:$4 sm:$0xff]   ;;  %v1797_v36 = vld [vmem:[#allocation2 + $0x48] ss:$28 sps:$4 sm:$0xff]   ;;  %v1801_v38 = vld [vmem:[#allocation2 + $0x80] ss:$28 sps:$4 sm:$0xff]  }
  0x32   :  { %278 = vmatprep.subr.bf16.mxu0 %v1582_v7  ;;  %v1618_v35 = vld [vmem:[#allocation2 + $0x194] ss:$28 sps:$4 sm:$0xff]   ;;  %v1816_v41 = vld [vmem:[#allocation2 + $0x128] ss:$28 sps:$4 sm:$0xff]   ;;  %v1822_v42 = vld [vmem:[#allocation2 + $0x160] ss:$28 sps:$4 sm:$0xff]  }
  0x33   :  { %v1620_v37 = vld [vmem:[#allocation2 + $0x190] ss:$28 sps:$4 sm:$0xff]   ;;  %v1805_v39 = vld [vmem:[#allocation2 + $0xb8] ss:$28 sps:$4 sm:$0xff]   ;;  %v1637_v49 = vld [vmem:[#allocation4 + $0x40] sm:$0xff]  }
  0x34   :  { %318 = vmatpush1.bf16.msra.mxu1 %v1605_v18  ;;  %v1810_v40 = vld [vmem:[#allocation2 + $0xf0] ss:$28 sps:$4 sm:$0xff]   ;;  %v1838_v43 = vld [vmem:[#allocation2 + $0x198] ss:$28 sps:$4 sm:$0xff]   ;;  %v1638_v52 = vld [vmem:[#allocation4] sm:$0xff]  }
  0x35   :  { %279 = vmatpush1.bf16.msra.mxu0 %v1584_v8  ;;  %319 = vmatprep.subr.bf16.mxu1 %v1606_v19  ;;  %v1639_v54 = vld [vmem:[#allocation4 + $0x48] sm:$0xff]   ;;  %v1641_v56 = vld [vmem:[#allocation4 + $0x50] sm:$0xff]   ;;  %v1643_v62 = vld [vmem:[#allocation4 + $0x58] sm:$0xff]  }
  0x36   :  { %280 = vmatprep.subr.bf16.mxu0 %v1585_v9  ;;  %v1640_v55 = vld [vmem:[#allocation4 + $0x8] sm:$0xff]   ;;  %v1642_v58 = vld [vmem:[#allocation4 + $0x10] sm:$0xff]   ;;  %v1644_v63 = vld [vmem:[#allocation4 + $0x18] sm:$0xff]  }
  0x37   :  { %v1645_v0 = vld [vmem:[#allocation4 + $0x60] sm:$0xff]   ;;  %v1647_v2 = vld [vmem:[#allocation4 + $0x68] sm:$0xff]   ;;  %v1649_v4 = vld [vmem:[#allocation4 + $0x70] sm:$0xff]  }
  0x38   :  { %320 = vmatpush1.bf16.msra.mxu1 %v1608_v22  ;;  %v1646_v1 = vld [vmem:[#allocation4 + $0x20] sm:$0xff]   ;;  %v1648_v3 = vld [vmem:[#allocation4 + $0x28] sm:$0xff]   ;;  %v1650_v5 = vld [vmem:[#allocation4 + $0x30] sm:$0xff]  }
  0x39   :  { %281 = vmatpush1.bf16.msra.mxu0 %v1587_v13  ;;  %321 = vmatprep.subr.bf16.mxu1 %v1609_v23  ;;  %v1651_v6 = vld [vmem:[#allocation4 + $0x78] sm:$0xff]   ;;  %v1655_v26 = vld [vmem:[#allocation4 + $0x90] sm:$0xff]  }
  0x3a   :  { %282 = vmatprep.subr.bf16.mxu0 %v1588_v16  ;;  %v1652_v7 = vld [vmem:[#allocation4 + $0x38] sm:$0xff]  }
  0x3c   :  { %322 = vmatpush1.bf16.msra.mxu1 %v1611_v27  ;;  %v1656_v27 = vld [vmem:[#allocation4 + $0x98] sm:$0xff]  }
  0x3d   :  { %283 = vmatpush1.bf16.msra.mxu0 %v1590_v17  ;;  %323 = vmatprep.subr.bf16.mxu1 %v1612_v28  ;;  %v1657_v28 = vld [vmem:[#allocation4 + $0xa0] sm:$0xff]  }
  0x3e   :  { %284 = vmatprep.subr.bf16.mxu0 %v1591_v20 }
  0x40   :  { %324 = vmatpush1.bf16.msra.mxu1 %v1614_v29  ;;  %v1658_v29 = vld [vmem:[#allocation4 + $0xa8] sm:$0xff]  }
  0x41   :  { %285 = vmatpush1.bf16.msra.mxu0 %v1593_v21  ;;  %325 = vmatprep.subr.bf16.mxu1 %v1615_v30  ;;  %v1659_v30 = vld [vmem:[#allocation4 + $0xb0] sm:$0xff]  }
  0x42   :  { %286 = vmatprep.subr.bf16.mxu0 %v1594_v24  ;;  %v1653_v24 = vld [vmem:[#allocation4 + $0x80] sm:$0xff]  }
  0x44   :  { %326 = vmatpush1.bf16.msra.mxu1 %v1617_v33 }
  0x45   :  { %287 = vmatpush1.bf16.msra.mxu0 %v1596_v25  ;;  %327 = vmatprep.subr.bf16.mxu1 %v1618_v35  ;;  %v1654_v25 = vld [vmem:[#allocation4 + $0x88] sm:$0xff]  }
  0x46   :  { %1364 = vmatprep.subr.bf16.mxu0 %v1740_v34 }
  0x48   :  { %305 = vmatmul.mubr.bf16.vlgmr.msra.gmra.mrb[0].mxu0 %v47_v32  ;;  %328 = vmatpush1.bf16.msra.mxu1 %v1620_v37 }
  0x49   :  { %1365 = vmatpush3.bf16.msra.mxu0 %v1794_v31  ;;  %1384 = vmatprep.subr.bf16.mxu1 %v1740_v34 }
  0x4a   :  { %1366 = vmatprep.subr.bf16.mxu0 %v1740_v34  ;;  %1380 = vmatprep.mubr.msk.bf16.mxu0 %vm1741_vm0, %v1740_v34 }
  0x4b   :  { %346 = vmatmul.mubr.bf16.vlgmr.msra.gmra.mrb[0].mxu1 %v47_v32 }
  0x4c   :  { %1385 = vmatpush3.bf16.msra.mxu1 %v1794_v31  ;;  %1400 = vmatprep.mubr.msk.bf16.mxu1 %vm1741_vm0, %v1740_v34 }
  0x4d   :  { %1367 = vmatpush3.bf16.msra.mxu0 %v1797_v36  ;;  %1386 = vmatprep.subr.bf16.mxu1 %v1740_v34 }
  0x4e   :  { %1368 = vmatprep.subr.bf16.mxu0 %v1740_v34 }
  0x50   :  { %1387 = vmatpush3.bf16.msra.mxu1 %v1797_v36 }
  0x51   :  { %1369 = vmatpush3.bf16.msra.mxu0 %v1801_v38  ;;  %1388 = vmatprep.subr.bf16.mxu1 %v1740_v34 }
  0x52   :  { %1370 = vmatprep.subr.bf16.mxu0 %v1740_v34 }
  0x54   :  { %1389 = vmatpush3.bf16.msra.mxu1 %v1801_v38 }
  0x55   :  { %1371 = vmatpush3.bf16.msra.mxu0 %v1805_v39  ;;  %1390 = vmatprep.subr.bf16.mxu1 %v1740_v34 }
  0x56   :  { %1372 = vmatprep.subr.bf16.mxu0 %v1740_v34 }
  0x58   :  { %1391 = vmatpush3.bf16.msra.mxu1 %v1805_v39 }
  0x59   :  { %1373 = vmatpush3.bf16.msra.mxu0 %v1810_v40  ;;  %1392 = vmatprep.subr.bf16.mxu1 %v1740_v34 }
  0x5a   :  { %1374 = vmatprep.subr.bf16.mxu0 %v1740_v34 }
  0x5c   :  { %1393 = vmatpush3.bf16.msra.mxu1 %v1810_v40 }
  0x5d   :  { %1375 = vmatpush3.bf16.msra.mxu0 %v1816_v41  ;;  %1394 = vmatprep.subr.bf16.mxu1 %v1740_v34 }
  0x5e   :  { %1376 = vmatprep.subr.bf16.mxu0 %v1740_v34 }
  0x60   :  { %1395 = vmatpush3.bf16.msra.mxu1 %v1816_v41 }
  0x61   :  { %1377 = vmatpush3.bf16.msra.mxu0 %v1822_v42  ;;  %1396 = vmatprep.subr.bf16.mxu1 %v1740_v34 }
  0x62   :  { %1378 = vmatprep.subr.bf16.mxu0 %v1740_v34 }
  0x64   :  { %1397 = vmatpush3.bf16.msra.mxu1 %v1822_v42 }
  0x65   :  { %1398 = vmatprep.subr.bf16.mxu1 %v1740_v34  ;;  %1379 = vmatpush3.bf16.msra.mxu0 %v1838_v43 }
  0x66   :  { %1404 = vmatprep.subr.bf16.mxu0 %v1740_v34 }
  0x68   :  { %1399 = vmatpush3.bf16.msra.mxu1 %v1838_v43 }
  0x69   :  { %1424 = vmatprep.subr.bf16.mxu1 %v1740_v34 }
 0x11b   :  { %v306_v44 = vpop.f32.mrb[0].mxu0 }
 0x11c   :  { %v354_v45 = vmax.f32 %v306_v44, 0.0  ;;  %v308_v46 = vpop.f32.mrb[1].mxu0 }
 0x11d   :  { %v355_v47 = vmax.f32 %v308_v46, 0.0  ;;  %v310_v48 = vpop.f32.mrb[2].mxu0  ;;  %v1661_v46 = vld [vmem:[#allocation4 + $0xc0] sm:$0xff]  }
 0x11e   :  { %v358_v50 = vpack.c.bf16 %v354_v45, %v354_v45  ;;  %v311_v51 = vpop.f32.mrb[3].mxu0  ;;  %v1854_v57 = vpop.f32.mrb[0].mxu1 }
 0x11f   :  { %v465_v53 = vpack.c.bf16 %v355_v47, %v355_v47  ;;  %v1857_v59 = vpop.f32.mrb[1].mxu1  ;;  %v356_v20 = vmax.f32 %v1854_v57, 0.0  ;;  %v1664_v51 = vld [vmem:[#allocation4 + $0xd8] sm:$0xff]  }
 0x120   :  { %1381 = vmatmul.mubr.bf16.vlgmr.msra.gmra.mrb[4].mxu0 %v358_v50  ;;  %v351_v60 = vpop.f32.mrb[2].mxu1  ;;  %v357_v22 = vmax.f32 %v1857_v59, 0.0  ;;  %v1663_v50 = vld [vmem:[#allocation4 + $0xd0] sm:$0xff]  }
 0x121   :  { %1401 = vmatmul.mubr.bf16.vlgmr.msra.gmra.mrb[4].mxu1 %v465_v53  ;;  %1405 = vmatpush3.bf16.msra.mxu0 %v1637_v49  ;;  %v352_v61 = vpop.f32.mrb[3].mxu1  ;;  %v700_v21 = vpack.c.bf16 %v356_v20, %v356_v20  ;;  %v1662_v49 = vld [vmem:[#allocation4 + $0xc8] sm:$0xff]  }
 0x122   :  { %1425 = vmatpush3.bf16.msra.mxu1 %v1638_v52  ;;  %1406 = vmatprep.subr.bf16.mxu0 %v1740_v34  ;;  %v848_v23 = vpack.c.bf16 %v357_v22, %v357_v22  ;;  %v1665_v52 = vld [vmem:[#allocation4 + $0xe0] sm:$0xff]   ;;  %v1666_v53 = vld [vmem:[#allocation4 + $0xe8] sm:$0xff]  }
 0x123   :  { %1426 = vmatprep.subr.bf16.mxu1 %v1740_v34  ;;  %1440 = vmatprep.mubr.msk.bf16.mxu1 %vm1741_vm0, %v1740_v34 }
 0x124   :  { %1420 = vmatprep.mubr.msk.bf16.mxu0 %vm1741_vm0, %v1740_v34 }
 0x125   :  { %1407 = vmatpush3.bf16.msra.mxu0 %v1639_v54  ;;  %v1667_v54 = vld [vmem:[#allocation4 + $0xf0] sm:$0xff]  }
 0x126   :  { %1427 = vmatpush3.bf16.msra.mxu1 %v1640_v55  ;;  %1408 = vmatprep.subr.bf16.mxu0 %v1740_v34  ;;  %v1668_v55 = vld [vmem:[#allocation4 + $0xf8] sm:$0xff]  }
 0x127   :  { %1428 = vmatprep.subr.bf16.mxu1 %v1740_v34 }
 0x129   :  { %1409 = vmatpush3.bf16.msra.mxu0 %v1641_v56 }
 0x12a   :  { %1429 = vmatpush3.bf16.msra.mxu1 %v1642_v58  ;;  %1410 = vmatprep.subr.bf16.mxu0 %v1740_v34 }
 0x12b   :  { %1430 = vmatprep.subr.bf16.mxu1 %v1740_v34 }
 0x12d   :  { %1411 = vmatpush3.bf16.msra.mxu0 %v1643_v62  ;;  %v1669_v62 = vld [vmem:[#allocation2 + $0x14] ss:$28 sps:$4 sm:$0xff]  }
 0x12e   :  { %1431 = vmatpush3.bf16.msra.mxu1 %v1644_v63  ;;  %1412 = vmatprep.subr.bf16.mxu0 %v1740_v34  ;;  %v1670_v63 = vld [vmem:[#allocation2 + $0x4c] ss:$28 sps:$4 sm:$0xff]  }
 0x12f   :  { %1432 = vmatprep.subr.bf16.mxu1 %v1740_v34 }
 0x131   :  { %1413 = vmatpush3.bf16.msra.mxu0 %v1645_v0  ;;  %v1671_v0 = vld [vmem:[#allocation2 + $0x84] ss:$28 sps:$4 sm:$0xff]  }
 0x132   :  { %1433 = vmatpush3.bf16.msra.mxu1 %v1646_v1  ;;  %1414 = vmatprep.subr.bf16.mxu0 %v1740_v34  ;;  %v1672_v1 = vld [vmem:[#allocation2 + $0xbc] ss:$28 sps:$4 sm:$0xff]  }
 0x133   :  { %1434 = vmatprep.subr.bf16.mxu1 %v1740_v34 }
 0x135   :  { %1415 = vmatpush3.bf16.msra.mxu0 %v1647_v2  ;;  %v1673_v2 = vld [vmem:[#allocation2 + $0xf4] ss:$28 sps:$4 sm:$0xff]  }
 0x136   :  { %1435 = vmatpush3.bf16.msra.mxu1 %v1648_v3  ;;  %1416 = vmatprep.subr.bf16.mxu0 %v1740_v34  ;;  %v1674_v3 = vld [vmem:[#allocation2 + $0x12c] ss:$28 sps:$4 sm:$0xff]  }
 0x137   :  { %1436 = vmatprep.subr.bf16.mxu1 %v1740_v34 }
 0x139   :  { %1417 = vmatpush3.bf16.msra.mxu0 %v1649_v4  ;;  %v1675_v4 = vld [vmem:[#allocation2 + $0x164] ss:$28 sps:$4 sm:$0xff]  }
 0x13a   :  { %1437 = vmatpush3.bf16.msra.mxu1 %v1650_v5  ;;  %1418 = vmatprep.subr.bf16.mxu0 %v1740_v34  ;;  %v1676_v5 = vld [vmem:[#allocation2 + $0x19c] ss:$28 sps:$4 sm:$0xff]  }
 0x13b   :  { %1438 = vmatprep.subr.bf16.mxu1 %v1740_v34 }
 0x13d   :  { %1419 = vmatpush3.bf16.msra.mxu0 %v1651_v6  ;;  %v1677_v6 = vld [vmem:[#allocation2 + $0x18] ss:$28 sps:$4 sm:$0xff]  }
 0x13e   :  { %1439 = vmatpush3.bf16.msra.mxu1 %v1652_v7  ;;  %1444 = vmatprep.subr.bf16.mxu0 %v1740_v34  ;;  %v1678_v7 = vld [vmem:[#allocation2 + $0x50] ss:$28 sps:$4 sm:$0xff]  }
 0x13f   :  { %1464 = vmatprep.subr.bf16.mxu1 %v1740_v34 }
 0x1f3   :  { %v441_v8 = vpop.f32.mrb[4].mxu0 }
 0x1f4   :  { %v447_v9 = vmax.f32 %v441_v8, 0.0  ;;  %v1382_v10 = vpop.f32.mrb[5].mxu0  ;;  %v500_v11 = vpop.f32.mrb[4].mxu1  ;;  %v1679_v8 = vld [vmem:[#allocation2 + $0x88] ss:$28 sps:$4 sm:$0xff]  }
 0x1f5   :  { %v506_v12 = vmax.f32 %v500_v11, 0.0  ;;  %v444_v13 = vpop.f32.mrb[6].mxu0  ;;  %v1402_v14 = vpop.f32.mrb[5].mxu1  ;;  %v1681_v10 = vld [vmem:[#allocation2 + $0xf8] ss:$28 sps:$4 sm:$0xff]  }
 0x1f6   :  { %v448_v15 = vpack.c.bf16 %v447_v9, %v447_v9  ;;  %v1383_v16 = vpop.f32.mrb[7].mxu0  ;;  %v503_v17 = vpop.f32.mrb[6].mxu1  ;;  %v1680_v9 = vld [vmem:[#allocation2 + $0xc0] ss:$28 sps:$4 sm:$0xff]   ;;  %v1682_v11 = vld [vmem:[#allocation2 + $0x130] ss:$28 sps:$4 sm:$0xff]  }
 0x1f7   :  { %v507_v18 = vpack.c.bf16 %v506_v12, %v506_v12  ;;  %v1403_v19 = vpop.f32.mrb[7].mxu1 }
 0x1f8   :  { %1441 = vmatmul.mubr.bf16.vlgmr.msra.gmra.mrb[8].mxu1 %v448_v15 }
 0x1f9   :  { %1421 = vmatmul.mubr.bf16.vlgmr.msra.gmra.mrb[8].mxu0 %v507_v18  ;;  %1480 = vmatprep.mubr.msk.bf16.mxu1 %vm1741_vm0, %v1740_v34  ;;  %v1255_v18 = vld [vmem:[%s1966_s3] ss:$0 sm:$0xff] }
 0x1fa   :  { %1445 = vmatpush3.bf16.msra.mxu0 %v1794_v31  ;;  %1460 = vmatprep.mubr.msk.bf16.mxu0 %vm1741_vm0, %v1740_v34 }
 0x1fb   :  { %1446 = vmatprep.subr.bf16.mxu0 %v1740_v34  ;;  %1465 = vmatpush3.bf16.msra.mxu1 %v1653_v24 }
 0x1fc   :  { %1466 = vmatprep.subr.bf16.mxu1 %v1740_v34 }
 0x1fe   :  { %1447 = vmatpush3.bf16.msra.mxu0 %v1797_v36 }
 0x1ff   :  { %1448 = vmatprep.subr.bf16.mxu0 %v1740_v34  ;;  %1467 = vmatpush3.bf16.msra.mxu1 %v1654_v25 }
 0x200   :  { %1468 = vmatprep.subr.bf16.mxu1 %v1740_v34 }
 0x202   :  { %1449 = vmatpush3.bf16.msra.mxu0 %v1801_v38 }
 0x203   :  { %1450 = vmatprep.subr.bf16.mxu0 %v1740_v34  ;;  %1469 = vmatpush3.bf16.msra.mxu1 %v1655_v26  ;;  %v1683_v26 = vld [vmem:[#allocation2 + $0x168] ss:$28 sps:$4 sm:$0xff]  }
 0x204   :  { %1470 = vmatprep.subr.bf16.mxu1 %v1740_v34 }
 0x206   :  { %1451 = vmatpush3.bf16.msra.mxu0 %v1805_v39 }
 0x207   :  { %1452 = vmatprep.subr.bf16.mxu0 %v1740_v34  ;;  %1471 = vmatpush3.bf16.msra.mxu1 %v1656_v27  ;;  %v1684_v27 = vld [vmem:[#allocation2 + $0x1a0] ss:$28 sps:$4 sm:$0xff]  }
 0x208   :  { %1472 = vmatprep.subr.bf16.mxu1 %v1740_v34 }
 0x20a   :  { %1453 = vmatpush3.bf16.msra.mxu0 %v1810_v40 }
 0x20b   :  { %1454 = vmatprep.subr.bf16.mxu0 %v1740_v34  ;;  %1473 = vmatpush3.bf16.msra.mxu1 %v1657_v28  ;;  %v1256_v28 = vld [vmem:[%s1966_s3 + $0x1] ss:$0 sm:$0xff] }
 0x20c   :  { %1474 = vmatprep.subr.bf16.mxu1 %v1740_v34 }
 0x20e   :  { %1455 = vmatpush3.bf16.msra.mxu0 %v1816_v41 }
 0x20f   :  { %1456 = vmatprep.subr.bf16.mxu0 %v1740_v34  ;;  %1475 = vmatpush3.bf16.msra.mxu1 %v1658_v29 }
 0x210   :  { %1476 = vmatprep.subr.bf16.mxu1 %v1740_v34 }
 0x212   :  { %1457 = vmatpush3.bf16.msra.mxu0 %v1822_v42 }
 0x213   :  { %1458 = vmatprep.subr.bf16.mxu0 %v1740_v34  ;;  %1477 = vmatpush3.bf16.msra.mxu1 %v1659_v30 }
 0x214   :  { %1478 = vmatprep.subr.bf16.mxu1 %v1740_v34 }
 0x216   :  { %1459 = vmatpush3.bf16.msra.mxu0 %v1838_v43 }
 0x217   :  { %1484 = vmatprep.subr.bf16.mxu0 %v1740_v34 }
 0x219   :  { %1461 = vmatmul.mubr.bf16.vlgmr.msra.gmra.mrb[12].mxu0 %v700_v21 }
 0x21a   :  { %1485 = vmatpush3.bf16.msra.mxu0 %v1794_v31  ;;  %1500 = vmatprep.mubr.msk.bf16.mxu0 %vm1741_vm0, %v1740_v34  ;;  %v1660_v31 = vld [vmem:[#allocation4 + $0xb8] sm:$0xff]  }
 0x21b   :  { %1486 = vmatprep.subr.bf16.mxu0 %v1740_v34  ;;  %1479 = vmatpush3.bf16.msra.mxu1 %v1660_v31 }
 0x21c   :  { %1504 = vmatprep.subr.bf16.mxu1 %v1740_v34 }
 0x21e   :  { %1487 = vmatpush3.bf16.msra.mxu0 %v1797_v36 }
 0x21f   :  { %1488 = vmatprep.subr.bf16.mxu0 %v1740_v34 }
 0x222   :  { %1489 = vmatpush3.bf16.msra.mxu0 %v1801_v38 }
 0x223   :  { %1490 = vmatprep.subr.bf16.mxu0 %v1740_v34 }
 0x226   :  { %1491 = vmatpush3.bf16.msra.mxu0 %v1805_v39 }
 0x227   :  { %1492 = vmatprep.subr.bf16.mxu0 %v1740_v34 }
 0x22a   :  { %1493 = vmatpush3.bf16.msra.mxu0 %v1810_v40 }
 0x22b   :  { %1494 = vmatprep.subr.bf16.mxu0 %v1740_v34 }
 0x22e   :  { %1495 = vmatpush3.bf16.msra.mxu0 %v1816_v41 }
 0x22f   :  { %1496 = vmatprep.subr.bf16.mxu0 %v1740_v34 }
 0x232   :  { %1497 = vmatpush3.bf16.msra.mxu0 %v1822_v42 }
 0x233   :  { %1498 = vmatprep.subr.bf16.mxu0 %v1740_v34 }
 0x236   :  { %1499 = vmatpush3.bf16.msra.mxu0 %v1838_v43 }
 0x237   :  { %1524 = vmatprep.subr.bf16.mxu0 %v1740_v34 }
 0x239   :  { %1501 = vmatmul.mubr.bf16.vlgmr.msra.gmra.mrb[16].mxu0 %v848_v23 }
 0x23a   :  { %1540 = vmatprep.mubr.msk.bf16.mxu0 %vm1741_vm0, %v1740_v34  ;;  %1525 = vmatpush3.bf16.msra.mxu0 %v1669_v62 }
 0x23b   :  { %1526 = vmatprep.subr.bf16.mxu0 %v1740_v34 }
 0x23e   :  { %1527 = vmatpush3.bf16.msra.mxu0 %v1670_v63 }
 0x23f   :  { %1528 = vmatprep.subr.bf16.mxu0 %v1740_v34 }
 0x242   :  { %1529 = vmatpush3.bf16.msra.mxu0 %v1671_v0 }
 0x243   :  { %1530 = vmatprep.subr.bf16.mxu0 %v1740_v34 }
 0x246   :  { %1531 = vmatpush3.bf16.msra.mxu0 %v1672_v1 }
 0x247   :  { %1532 = vmatprep.subr.bf16.mxu0 %v1740_v34 }
 0x24a   :  { %1533 = vmatpush3.bf16.msra.mxu0 %v1673_v2 }
 0x24b   :  { %1534 = vmatprep.subr.bf16.mxu0 %v1740_v34 }
 0x24e   :  { %1535 = vmatpush3.bf16.msra.mxu0 %v1674_v3 }
 0x24f   :  { %1536 = vmatprep.subr.bf16.mxu0 %v1740_v34 }
 0x252   :  { %1537 = vmatpush3.bf16.msra.mxu0 %v1675_v4 }
 0x253   :  { %1538 = vmatprep.subr.bf16.mxu0 %v1740_v34 }
 0x256   :  { %1539 = vmatpush3.bf16.msra.mxu0 %v1676_v5 }
 0x2cb   :  { %v694_v32 = vpop.f32.mrb[8].mxu1 }
 0x2cc   :  { %v606_v33 = vpop.f32.mrb[8].mxu0  ;;  %v1442_v35 = vpop.f32.mrb[9].mxu1 }
 0x2cd   :  { %v1922_v36 = vadd.f32 %v694_v32, %v606_v33  ;;  %v1422_v37 = vpop.f32.mrb[9].mxu0  ;;  %v697_v38 = vpop.f32.mrb[10].mxu1 }
 0x2ce   :  { %v609_v39 = vpop.f32.mrb[10].mxu0  ;;  %v1443_v40 = vpop.f32.mrb[11].mxu1  ;;  %v1265_v37 = vld [vmem:[%s1966_s3 + $0x2] ss:$0 sm:$0xff] }
 0x2cf   :  { %v1423_v41 = vpop.f32.mrb[11].mxu0 }
 0x2ec   :  { %v735_v42 = vpop.f32.mrb[12].mxu0 }
 0x2ed   :  { %v741_v43 = vmax.f32 %v735_v42, 0.0  ;;  %v1462_v44 = vpop.f32.mrb[13].mxu0 }
 0x2ee   :  { %v738_v45 = vpop.f32.mrb[14].mxu0 }
 0x2ef   :  { %v742_v47 = vpack.c.bf16 %v741_v43, %v741_v43  ;;  %v1463_v48 = vpop.f32.mrb[15].mxu0 }
 0x2f1   :  { %1481 = vmatmul.mubr.bf16.vlgmr.msra.gmra.mrb[12].mxu1 %v742_v47 }
 0x2f2   :  { %1505 = vmatpush3.bf16.msra.mxu1 %v1661_v46  ;;  %1520 = vmatprep.mubr.msk.bf16.mxu1 %vm1741_vm0, %v1740_v34 }
 0x2f3   :  { %1506 = vmatprep.subr.bf16.mxu1 %v1740_v34 }
 0x2f6   :  { %1507 = vmatpush3.bf16.msra.mxu1 %v1662_v49 }
 0x2f7   :  { %1508 = vmatprep.subr.bf16.mxu1 %v1740_v34 }
 0x2fa   :  { %1509 = vmatpush3.bf16.msra.mxu1 %v1663_v50 }
 0x2fb   :  { %1510 = vmatprep.subr.bf16.mxu1 %v1740_v34 }
 0x2fe   :  { %1511 = vmatpush3.bf16.msra.mxu1 %v1664_v51 }
 0x2ff   :  { %1512 = vmatprep.subr.bf16.mxu1 %v1740_v34 }
 0x302   :  { %1513 = vmatpush3.bf16.msra.mxu1 %v1665_v52 }
 0x303   :  { %1514 = vmatprep.subr.bf16.mxu1 %v1740_v34 }
 0x306   :  { %1515 = vmatpush3.bf16.msra.mxu1 %v1666_v53 }
 0x307   :  { %1516 = vmatprep.subr.bf16.mxu1 %v1740_v34 }
 0x30a   :  { %1517 = vmatpush3.bf16.msra.mxu1 %v1667_v54 }
 0x30b   :  { %1518 = vmatprep.subr.bf16.mxu1 %v1740_v34 }
 0x30c   :  { %v883_v56 = vpop.f32.mrb[16].mxu0 }
 0x30d   :  { %v889_v57 = vmax.f32 %v883_v56, 0.0  ;;  %v1502_v58 = vpop.f32.mrb[17].mxu0 }
 0x30e   :  { %v886_v59 = vpop.f32.mrb[18].mxu0  ;;  %1519 = vmatpush3.bf16.msra.mxu1 %v1668_v55 }
 0x30f   :  { %v890_v60 = vpack.c.bf16 %v889_v57, %v889_v57  ;;  %v1503_v61 = vpop.f32.mrb[19].mxu0  ;;  %1544 = vmatprep.subr.bf16.mxu1 %v1740_v34 }
 0x311   :  { %1521 = vmatmul.mubr.bf16.vlgmr.msra.gmra.mrb[16].mxu1 %v890_v60 }
 0x312   :  { %1560 = vmatprep.mubr.msk.bf16.mxu1 %vm1741_vm0, %v1740_v34  ;;  %1545 = vmatpush3.bf16.msra.mxu1 %v1677_v6 }
 0x313   :  { %1546 = vmatprep.subr.bf16.mxu1 %v1740_v34 }
 0x316   :  { %1547 = vmatpush3.bf16.msra.mxu1 %v1678_v7 }
 0x317   :  { %1548 = vmatprep.subr.bf16.mxu1 %v1740_v34 }
 0x31a   :  { %1549 = vmatpush3.bf16.msra.mxu1 %v1679_v8 }
 0x31b   :  { %1550 = vmatprep.subr.bf16.mxu1 %v1740_v34 }
 0x31e   :  { %1551 = vmatpush3.bf16.msra.mxu1 %v1680_v9 }
 0x31f   :  { %1552 = vmatprep.subr.bf16.mxu1 %v1740_v34 }
 0x322   :  { %1553 = vmatpush3.bf16.msra.mxu1 %v1681_v10 }
 0x323   :  { %1554 = vmatprep.subr.bf16.mxu1 %v1740_v34 }
 0x326   :  { %1555 = vmatpush3.bf16.msra.mxu1 %v1682_v11 }
 0x327   :  { %1556 = vmatprep.subr.bf16.mxu1 %v1740_v34 }
 0x32a   :  { %1557 = vmatpush3.bf16.msra.mxu1 %v1683_v26 }
 0x32b   :  { %1558 = vmatprep.subr.bf16.mxu1 %v1740_v34 }
 0x32e   :  { %1559 = vmatpush3.bf16.msra.mxu1 %v1684_v27 }
 0x3c4   :  { %v841_v12 = vpop.f32.mrb[12].mxu1 }
 0x3c5   :  { %v847_v13 = vadd.f32 %v841_v12, %v1922_v36  ;;  %v1482_v14 = vpop.f32.mrb[13].mxu1 }
 0x3c6   :  { %v844_v15 = vpop.f32.mrb[14].mxu1 }
 0x3c7   :  { %v1483_v16 = vpop.f32.mrb[15].mxu1 }
 0x3e4   :  { %v989_v17 = vpop.f32.mrb[16].mxu1 }
 0x3e5   :  { %v995_v19 = vadd.f32 %v989_v17, %v847_v13  ;;  %v1522_v20 = vpop.f32.mrb[17].mxu1 }
 0x3e6   :  { %v992_v21 = vpop.f32.mrb[18].mxu1 }
 0x3e7   :  { %v1001_v22 = vadd.f32 %v1255_v18, %v995_v19  ;;  %v1523_v23 = vpop.f32.mrb[19].mxu1 }
 0x3e9   :  { %v1002_v24 = vmax.f32 %v1001_v22, 0.0 }
 0x3eb   :  { %v1003_v25 = vpack.c.bf16 %v1002_v24, %v1002_v24 }
 0x3ed   :  { %1541 = vmatmul.mubr.bf16.vlgmr.msra.gmra.mrb[20].mxu0 %v1003_v25 }
 0x4c0   :  { %v1075_v29 = vpop.f32.mrb[20].mxu0 }
 0x4c1   :  { %v1076_v30 = vadd.f32 %v1256_v28, %v1075_v29  ;;  %v1542_v31 = vpop.f32.mrb[21].mxu0 }
 0x4c2   :  { %v1078_v32 = vpop.f32.mrb[22].mxu0 }
 0x4c3   :  { %v1081_v33 = vmax.f32 %v1076_v30, 0.0  ;;  %v1543_v35 = vpop.f32.mrb[23].mxu0 }
 0x4c5   :  { %v1082_v36 = vpack.c.bf16 %v1081_v33, %v1081_v33 }
 0x4c7   :  { %1561 = vmatmul.mubr.bf16.vlgmr.msra.gmra.mrb[20].mxu1 %v1082_v36 }
 0x59a   :  { %v1170_v38 = vpop.f32.mrb[20].mxu1 }
 0x59b   :  { %v1171_v34 = vadd.f32 %v1265_v37, %v1170_v38  ;;  %v1562_v39 = vpop.f32.mrb[21].mxu1 }
 0x59c   :  { %v1173_v40 = vpop.f32.mrb[22].mxu1 }
 0x59d   :  { %1176 = vst [vmem:[%s1967_s4] sm:$0xff] %v1171_v34  ;;  %v1563_v41 = vpop.f32.mrb[23].mxu1 }
 0x59e   :  { %1181 = vsyncpa [#allocation3], 1 }
 0x59f   :  { %1182 = vsyncpa [#allocation5], 1 }

</bundles_post_ra>
